<compile_context>
chip_gen: v5e
topology: v5e:2x2
jax: 0.10.0
libtpu: 0.0.40
codegen_flags: <defaults>
</compile_context>

<pallas_src>
import jax
import jax.numpy as jnp
from jax.experimental import pallas as pl
from jax.experimental.pallas import tpu as pltpu


def _copy_kernel(x_ref, o_ref):
    # pure streaming identity copy; no in-VMEM data movement
    o_ref[...] = x_ref[...]


def _choose_tiling(total_elems, itemsize):
    """Pick a lane-dense (rows, LANE) factorization and a row-tile size.

    Returns (lane, rows, tile_rows) or None if total is not a multiple of 128
    (fallback path handles that case with a single full-array block).
    """
    lane = 0
    for cand in (1024, 512, 256, 128):
        if total_elems % cand == 0:
            lane = cand
            break
    if lane == 0:
        return None
    rows = total_elems // lane
    # Target ~2 MiB per block: big enough to amortize per-step overhead,
    # small enough that 2x(in)+2x(out) double-buffering fits v7x's tighter VMEM.
    target_rows = max(8, (2 * 1024 * 1024) // (lane * itemsize))
    tile_rows = rows
    if rows > target_rows:
        start = min(target_rows, rows)
        start -= start % 8
        for cand in range(start, 0, -8):
            if cand > 0 and rows % cand == 0:
                tile_rows = cand
                break
    return lane, rows, tile_rows


def pallas_identity_copy(x):
    """Explicit materialized copy of x via a lane-dense tiled Pallas kernel."""
    total = x.size
    itemsize = jnp.dtype(x.dtype).itemsize
    tiling = _choose_tiling(total, itemsize)

    compiler_params = pltpu.CompilerParams(
        dimension_semantics=("parallel",),
        vmem_limit_bytes=32 * 1024 * 1024,  # explicit; safe on v5e/v6e/v7x
    )

    if tiling is None:
        # Rare fallback (total not a multiple of 128): single full-array block.
        return pl.pallas_call(
            _copy_kernel,
            out_shape=jax.ShapeDtypeStruct(x.shape, x.dtype),
            grid_spec=pltpu.PrefetchScalarGridSpec(
                num_scalar_prefetch=0,
                grid=(1,),
                in_specs=[pl.BlockSpec(x.shape, lambda i: (0,) * x.ndim)],
                out_specs=pl.BlockSpec(x.shape, lambda i: (0,) * x.ndim),
            ),
            compiler_params=compiler_params,
        )(x)

    lane, rows, tile_rows = tiling
    x2 = x.reshape(rows, lane)  # layout plumbing in the wrapper, not in-kernel
    out2 = pl.pallas_call(
        _copy_kernel,
        out_shape=jax.ShapeDtypeStruct((rows, lane), x.dtype),
        grid_spec=pltpu.PrefetchScalarGridSpec(
            num_scalar_prefetch=0,
            grid=(rows // tile_rows,),
            in_specs=[pl.BlockSpec((tile_rows, lane), lambda i: (i, 0))],
            out_specs=pl.BlockSpec((tile_rows, lane), lambda i: (i, 0)),
        ),
        compiler_params=compiler_params,
    )(x2)
    return out2.reshape(x.shape)


def split_table(x, dim, materialize=False):
    """JAX equivalent of SplitTable(dim).forward(x).

    x.split(x.size(dim), dim) always yields a single chunk that is the whole
    tensor, and PyTorch returns views -- so the default hot path is a
    zero-copy 1-tuple (no HBM traffic, no kernel launch).  Set
    materialize=True to force an explicit buffer produced by the Pallas
    identity-copy kernel.
    """
    ndim = x.ndim
    d = dim + ndim if dim < 0 else dim
    if not (0 <= d < ndim):
        raise ValueError(f"dim {dim} out of range for {ndim}-D tensor")
    if materialize:
        return (pallas_identity_copy(x),)
    return (x,)


if __name__ == "__main__":
    key = jax.random.PRNGKey(0)
    x = jax.random.normal(key, (2, 4, 16, 16), dtype=jnp.float32)
    dim = 1  # any valid dim gives the same (whole-tensor,) result

    # Default, faithful path: zero-copy view-style return.
    result = split_table(x, dim)
    assert isinstance(result, tuple) and len(result) == 1
    assert result[0].shape == x.shape and result[0].dtype == x.dtype

    # Explicit-buffer path: run the Pallas copy kernel once and verify.
    result_copy = split_table(x, dim, materialize=True)
    jax.block_until_ready(result_copy)
    assert isinstance(result_copy, tuple) and len(result_copy) == 1
    assert result_copy[0].shape == x.shape and result_copy[0].dtype == x.dtype
    assert bool(jnp.all(result_copy[0] == x))
    assert bool(jnp.all(result[0] == x))

    print("KERNEL_OK")
</pallas_src>

<mosaic_0001>
module attributes {stable_mosaic.version = 11 : i64} {
  func.func @_copy_kernel(%arg0: i32, %arg1: memref<2x1024xf32, #tpu.memory_space<vmem>>, %arg2: memref<2x1024xf32, #tpu.memory_space<vmem>>) attributes {dimension_semantics = [#tpu.dimension_semantics<parallel>], iteration_bounds = array<i64: 1>, scalar_prefetch = 0 : i64, scratch_operands = 0 : i64, tpu.core_type = #tpu.core_type<tc>, window_params = [{transform_indices = @transform_0, window_bounds = array<i64: 2, 1024>}, {transform_indices = @transform_1, window_bounds = array<i64: 2, 1024>}]} {
    %c0 = arith.constant 0 : index
    %c0_0 = arith.constant 0 : index
    %0 = vector.load %arg1[%c0, %c0_0] : memref<2x1024xf32, #tpu.memory_space<vmem>>, vector<2x1024xf32>
    %c0_1 = arith.constant 0 : index
    %c0_2 = arith.constant 0 : index
    %1 = vector.load %arg2[%c0_1, %c0_2] : memref<2x1024xf32, #tpu.memory_space<vmem>>, vector<2x1024xf32>
    tpu.vector_store %arg2[%c0_1, %c0_2], %0 {strides = array<i32>} : memref<2x1024xf32, #tpu.memory_space<vmem>>, vector<2x1024xf32>,
    return
  }
  func.func @transform_0(%arg0: i32) -> (i32, i32) {
    %c0_i32 = arith.constant 0 : i32
    %c0_i32_0 = arith.constant 0 : i32
    return %arg0, %c0_i32 : i32, i32
  }
  func.func @transform_1(%arg0: i32) -> (i32, i32) {
    %c0_i32 = arith.constant 0 : i32
    %c0_i32_0 = arith.constant 0 : i32
    return %arg0, %c0_i32 : i32, i32
  }
}

</mosaic_0001>

<bundles_post_ra>
// kernel: tpu_custom_call.1
= control target key start
LH: loop header
LB: loop body
LE: loop exit
PB: predicated region body
PF: predicated region fallthrough
CT: control target
= control target key end

     0   :  { %6 = vsyncpa [#allocation3], 0  ;;  %s116_s0 = inlined_call_operand.hbm [shape: f32[2,1024], index: 0, kind: input, shape index: {}]   ;;  %s117_s1 = inlined_call_operand.hbm [shape: f32[2,1024], index: 1, kind: output, shape index: {}]  }
   0x1   :  { %7 = vsyncpa [#allocation4], 0  ;;  %s13_s8 = sshll.u32 %s116_s0, 4  ;;  %s98_s9 = smov [#allocation2]   ;;  %s14_s8 = int_to_ptr.hbm [resolvable:$true] %s13_s8 }
   0x2   :  { %s15_s10 = sshll.u32 %s98_s9, 4  ;;  %s16_s10 = int_to_ptr.vmem [resolvable:$true] %s15_s10 }
   0x3   :  { %18 = dma.hbm_to_vmem [thread:$0]  %s14_s8, 256, %s16_s10, [#allocation3]  }
   0x4   :  { %94 = dma.done.wait [#allocation3], 256  }
   0x5   :  { %95 = vsyncadd [#allocation3], 4294967040  ;;  %s99_s11 = smov [#allocation5]   ;;  %s34_s15 = sshll.u32 %s117_s1, 4  ;;  %v23_v0 = vld [vmem:[#allocation2] sm:$0xff]  ;;  %v24_v1 = vld [vmem:[#allocation2 + $0x8] sm:$0xff]  ;;  %s35_s15 = int_to_ptr.hbm [resolvable:$true] %s34_s15 }
   0x6   :  { %s32_s12 = sshll.u32 %s99_s11, 4  ;;  %25 = vst [vmem:[#allocation5] sm:$0xff] %v23_v0  ;;  %s33_s12 = int_to_ptr.vmem [resolvable:$true] %s32_s12 }
   0x7   :  { %26 = vst [vmem:[#allocation5 + $0x8] sm:$0xff] %v24_v1 }
   0x8   :  { %37 = dma.vmem_to_hbm [thread:$0]  %s33_s12, 256, %s35_s15, [#allocation4]  }
   0x9   :  { %96 = dma.done.wait [#allocation4], 256  }
   0xa   :  { %97 = vsyncadd [#allocation4], 4294967040 }
   0xb   :  { %42 = vsyncpa [#allocation3], 1 }
   0xc   :  { %43 = vsyncpa [#allocation4], 1 }

</bundles_post_ra>
